<compile_context>
chip_gen: v7x
topology: tpu7x:2x2x1
jax: 0.10.0
libtpu: 0.0.40
codegen_flags: <defaults>
</compile_context>

<pallas_src>
import functools

import jax
import jax.numpy as jnp
from jax.experimental import pallas as pl
from jax.experimental.pallas import tpu as pltpu

LANE = 128      # lane width: padded feature dims are multiples of this
SUBLANE = 16    # batch-tile multiple (bf16-friendly; also a multiple of 8 for f32)


def _round_up(n, m):
    return ((n + m - 1) // m) * m


def _num_tensorcores_per_chip():
    """2 TensorCores per chip on v7x (and v4 megacore), 1 on v5e/v6e."""
    try:
        kind = jax.devices()[0].device_kind.lower()
    except Exception:
        return 1
    if "v7" in kind or "7x" in kind or "v4" in kind:
        return 2
    return 1


def _mlp_fused_kernel(*refs, n_layers: int):
    """Fused MLP on one batch tile.

    refs = (x_ref, w0_ref, b0_ref, w1_ref, b1_ref, ..., o_ref)
      x_ref : (tm, K)        VMEM, f32 (K unpadded)
      wL_ref: (KL, NLp)      VMEM, bf16, pre-transposed to (in, out), out padded
      bL_ref: (1,  NLp)      VMEM, f32
      o_ref : (tm, NLast_p)  VMEM
    bf16 MXU operands, f32 accumulation; bias add + ReLU in f32.
    Intermediates stay in vregs -> no HBM round-trips between layers.
    """
    x_ref = refs[0]
    o_ref = refs[-1]

    h = x_ref[...]
    for l in range(n_layers):
        w = refs[1 + 2 * l][...]                       # bf16 weights (resident)
        b = refs[2 + 2 * l][...]                       # f32 bias (1, out_p)
        h = jnp.dot(h.astype(w.dtype), w,
                    preferred_element_type=jnp.float32) + b
        if l < n_layers - 1:
            h = jnp.maximum(h, 0.0)                    # ReLU on hidden layers only
    o_ref[...] = h.astype(o_ref.dtype)


def init_mlp_params(key, input_dim, output_dim, hiddens):
    """Deterministic init mimicking nn.Linear's U(-1/sqrt(fan_in), +).

    Stored in PyTorch convention: weight (out, in), bias (out,), f32.
    """
    dims = [input_dim] + list(hiddens) + [output_dim]
    params = []
    for i in range(len(dims) - 1):
        fan_in, fan_out = dims[i], dims[i + 1]
        key, kw, kb = jax.random.split(key, 3)
        bound = 1.0 / jnp.sqrt(float(fan_in))
        w = jax.random.uniform(kw, (fan_out, fan_in), jnp.float32, -bound, bound)
        b = jax.random.uniform(kb, (fan_out,), jnp.float32, -bound, bound)
        params.append((w, b))
    return params


def prepare_params(params, param_dtype=jnp.bfloat16):
    """One-time prep: transpose to (in, out), bias to (1, out), zero-pad the
    OUT dim of every layer to a multiple of LANE (lane-dense matmuls/stores),
    pad the IN dim of layers >0 to match the previous padded out dim, keep the
    first layer's IN dim unpadded (so x needs no feature padding), and cast
    weights to bf16 (f32 accumulation happens in-kernel).

    Zero padding is exact: padded input columns hit zero weight rows, padded
    output columns get zero bias -> ReLU(0)=0 -> contribute nothing downstream.
    """
    padded = []
    prev_out_p = None
    for idx, (w, b) in enumerate(params):
        out_d, in_d = w.shape
        in_p = in_d if idx == 0 else prev_out_p
        out_p = _round_up(out_d, LANE)
        w_t = jnp.zeros((in_p, out_p), jnp.float32).at[:in_d, :out_d].set(w.T)
        b_p = jnp.zeros((1, out_p), jnp.float32).at[:, :out_d].set(b)
        padded.append((w_t.astype(param_dtype), b_p))
        prev_out_p = out_p
    return padded


def _build_in_specs(K, padded_params, tm, single_buffer_consts):
    in_specs = [pl.BlockSpec((tm, K), lambda i: (i, 0))]   # x batch tile, K = full dim
    const_kwargs = {}
    if single_buffer_consts:
        # Same block every grid step -> no double buffering needed.
        const_kwargs = dict(pipeline_mode=pl.Buffered(1))
    for w_t, b_p in padded_params:
        kw, nw = w_t.shape
        in_specs.append(pl.BlockSpec((kw, nw), lambda i: (0, 0), **const_kwargs))
        in_specs.append(pl.BlockSpec((1, nw), lambda i: (0, 0), **const_kwargs))
    return in_specs


def mlp_forward(x, padded_params, out_dim, *, max_tile=512):
    """Fused forward pass: one pallas_call for the whole MLP."""
    M, K = x.shape
    n_layers = len(padded_params)
    Np = padded_params[-1][0].shape[1]

    # Generation-aware batch tiling: one tile per TensorCore unless the
    # per-core tile would exceed max_tile (then pipelining takes over).
    n_cores = _num_tensorcores_per_chip()
    tm = min(_round_up(pl.cdiv(max(M, SUBLANE), n_cores), SUBLANE), max_tile)
    Mp = _round_up(M, tm)
    grid = (Mp // tm,)

    # Pad batch rows only when strictly necessary (K is never padded).
    x_in = x if Mp == M else jnp.zeros((Mp, K), x.dtype).at[:M].set(x)

    flat_params = []
    for w_t, b_p in padded_params:
        flat_params.extend([w_t, b_p])

    # VMEM budget from the real footprint (weights possibly double-buffered,
    # double-buffered x/out tiles) + compiler-scratch headroom; never all of
    # v7x's 64 MiB physical VMEM.
    param_bytes = sum(int(a.size) * a.dtype.itemsize for a in flat_params)
    io_bytes = 2 * (tm * K + tm * Np) * x.dtype.itemsize
    vmem_limit = int(min(max(2 * param_bytes + io_bytes + (4 << 20), 8 << 20),
                         32 << 20))

    kernel = functools.partial(_mlp_fused_kernel, n_layers=n_layers)
    out_shape = jax.ShapeDtypeStruct((Mp, Np), x.dtype)
    out_spec = pl.BlockSpec((tm, Np), lambda i: (i, 0))
    compiler_params = pltpu.CompilerParams(
        dimension_semantics=("parallel",),      # shards tiles across TCs on v7x
        vmem_limit_bytes=vmem_limit,
    )

    def call(single_buffer_consts):
        return pl.pallas_call(
            kernel,
            out_shape=out_shape,
            grid_spec=pltpu.PrefetchScalarGridSpec(
                num_scalar_prefetch=0,
                grid=grid,
                in_specs=_build_in_specs(K, padded_params, tm,
                                         single_buffer_consts),
                out_specs=out_spec,
            ),
            compiler_params=compiler_params,
        )(x_in, *flat_params)

    try:
        out_p = call(True)          # single-buffer the constant weight/bias blocks
    except Exception:
        out_p = call(False)         # pipeline_mode unsupported: default buffering

    # Slice off batch / lane padding only when present.
    if Mp != M or Np != out_dim:
        out_p = out_p[:M, :out_dim]
    return out_p


def mlp_reference(x, params):
    """Pure-JAX f32 reference (PyTorch semantics) for correctness checking."""
    n_layers = len(params)
    for idx, (w, b) in enumerate(params):
        x = x @ w.T + b
        if idx < n_layers - 1:
            x = jnp.maximum(x, 0.0)
    return x


if __name__ == "__main__":
    key = jax.random.PRNGKey(0)

    # MPL(input=16, output=8, hiddens=[32, 32]) on a batch of 64 examples.
    batch, input_dim, output_dim = 64, 16, 8
    hiddens = (32, 32)

    key, kx, kp = jax.random.split(key, 3)
    x = jax.random.normal(kx, (batch, input_dim), jnp.float32)
    params = init_mlp_params(kp, input_dim, output_dim, hiddens)

    # One-time parameter prep (transpose + lane padding + bf16 cast).
    padded_params = prepare_params(params)

    out = mlp_forward(x, padded_params, output_dim)
    out = jax.block_until_ready(out)

    ref = mlp_reference(x, params)
    assert out.shape == (batch, output_dim)
    # Tolerance reflects bf16 MXU operands with f32 accumulation (~0.4% rel.).
    assert jnp.allclose(out, ref, atol=5e-2, rtol=5e-2), "mismatch vs reference"

    print("KERNEL_OK")
</pallas_src>

<mosaic_0001>
module attributes {stable_mosaic.version = 11 : i64} {
  func.func @_mlp_fused_kernel(%arg0: i32, %arg1: memref<64x16xf32, #tpu.memory_space<vmem>>, %arg2: memref<16x128xbf16, #tpu.memory_space<vmem>>, %arg3: memref<1x128xf32, #tpu.memory_space<vmem>>, %arg4: memref<128x128xbf16, #tpu.memory_space<vmem>>, %arg5: memref<1x128xf32, #tpu.memory_space<vmem>>, %arg6: memref<128x128xbf16, #tpu.memory_space<vmem>>, %arg7: memref<1x128xf32, #tpu.memory_space<vmem>>, %arg8: memref<64x128xf32, #tpu.memory_space<vmem>>) attributes {dimension_semantics = [#tpu.dimension_semantics<parallel>], iteration_bounds = array<i64: 1>, scalar_prefetch = 0 : i64, scratch_operands = 0 : i64, tpu.core_type = #tpu.core_type<tc>, window_params = [{transform_indices = @transform_0, window_bounds = array<i64: 64, 16>}, {pipeline_mode = #tpu.pipeline_mode<synchronous>, transform_indices = @transform_1, window_bounds = array<i64: 16, 128>}, {pipeline_mode = #tpu.pipeline_mode<synchronous>, transform_indices = @transform_2, window_bounds = array<i64: 1, 128>}, {pipeline_mode = #tpu.pipeline_mode<synchronous>, transform_indices = @transform_3, window_bounds = array<i64: 128, 128>}, {pipeline_mode = #tpu.pipeline_mode<synchronous>, transform_indices = @transform_4, window_bounds = array<i64: 1, 128>}, {pipeline_mode = #tpu.pipeline_mode<synchronous>, transform_indices = @transform_5, window_bounds = array<i64: 128, 128>}, {pipeline_mode = #tpu.pipeline_mode<synchronous>, transform_indices = @transform_6, window_bounds = array<i64: 1, 128>}, {transform_indices = @transform_7, window_bounds = array<i64: 64, 128>}]} {
    %c0 = arith.constant 0 : index
    %c0_0 = arith.constant 0 : index
    %0 = vector.load %arg1[%c0, %c0_0] : memref<64x16xf32, #tpu.memory_space<vmem>>, vector<64x16xf32>
    %c0_1 = arith.constant 0 : index
    %c0_2 = arith.constant 0 : index
    %1 = vector.load %arg2[%c0_1, %c0_2] : memref<16x128xbf16, #tpu.memory_space<vmem>>, vector<16x128xbf16>
    %c0_3 = arith.constant 0 : index
    %c0_4 = arith.constant 0 : index
    %2 = vector.load %arg3[%c0_3, %c0_4] : memref<1x128xf32, #tpu.memory_space<vmem>>, vector<1x128xf32>
    %3 = arith.truncf %0 : vector<64x16xf32> to vector<64x16xbf16>
    %cst = arith.constant dense<0.000000e+00> : vector<64x128xf32>
    %4 = tpu.matmul %3, %1, %cst {dimension_numbers = #tpu.dot_dimension_numbers<[1], [0], [0], [1], [0, 0, 1, 1], [], []>} : vector<64x16xbf16>, vector<16x128xbf16>, vector<64x128xf32> -> vector<64x128xf32>
    %5 = vector.broadcast %2 : vector<1x128xf32> to vector<64x128xf32>
    %6 = arith.addf %4, %5 : vector<64x128xf32>
    %cst_5 = arith.constant 0.000000e+00 : f32
    %7 = vector.broadcast %cst_5 : f32 to vector<64x128xf32>
    %8 = arith.maximumf %6, %7 : vector<64x128xf32>
    %c0_6 = arith.constant 0 : index
    %c0_7 = arith.constant 0 : index
    %9 = vector.load %arg4[%c0_6, %c0_7] : memref<128x128xbf16, #tpu.memory_space<vmem>>, vector<128x128xbf16>
    %c0_8 = arith.constant 0 : index
    %c0_9 = arith.constant 0 : index
    %10 = vector.load %arg5[%c0_8, %c0_9] : memref<1x128xf32, #tpu.memory_space<vmem>>, vector<1x128xf32>
    %11 = arith.truncf %8 : vector<64x128xf32> to vector<64x128xbf16>
    %cst_10 = arith.constant dense<0.000000e+00> : vector<64x128xf32>
    %12 = tpu.matmul %11, %9, %cst_10 {dimension_numbers = #tpu.dot_dimension_numbers<[1], [0], [0], [1], [0, 0, 1, 1], [], []>} : vector<64x128xbf16>, vector<128x128xbf16>, vector<64x128xf32> -> vector<64x128xf32>
    %13 = vector.broadcast %10 : vector<1x128xf32> to vector<64x128xf32>
    %14 = arith.addf %12, %13 : vector<64x128xf32>
    %cst_11 = arith.constant 0.000000e+00 : f32
    %15 = vector.broadcast %cst_11 : f32 to vector<64x128xf32>
    %16 = arith.maximumf %14, %15 : vector<64x128xf32>
    %c0_12 = arith.constant 0 : index
    %c0_13 = arith.constant 0 : index
    %17 = vector.load %arg6[%c0_12, %c0_13] : memref<128x128xbf16, #tpu.memory_space<vmem>>, vector<128x128xbf16>
    %c0_14 = arith.constant 0 : index
    %c0_15 = arith.constant 0 : index
    %18 = vector.load %arg7[%c0_14, %c0_15] : memref<1x128xf32, #tpu.memory_space<vmem>>, vector<1x128xf32>
    %19 = arith.truncf %16 : vector<64x128xf32> to vector<64x128xbf16>
    %cst_16 = arith.constant dense<0.000000e+00> : vector<64x128xf32>
    %20 = tpu.matmul %19, %17, %cst_16 {dimension_numbers = #tpu.dot_dimension_numbers<[1], [0], [0], [1], [0, 0, 1, 1], [], []>} : vector<64x128xbf16>, vector<128x128xbf16>, vector<64x128xf32> -> vector<64x128xf32>
    %21 = vector.broadcast %18 : vector<1x128xf32> to vector<64x128xf32>
    %22 = arith.addf %20, %21 : vector<64x128xf32>
    %c0_17 = arith.constant 0 : index
    %c0_18 = arith.constant 0 : index
    %23 = vector.load %arg8[%c0_17, %c0_18] : memref<64x128xf32, #tpu.memory_space<vmem>>, vector<64x128xf32>
    tpu.vector_store %arg8[%c0_17, %c0_18], %22 {strides = array<i32>} : memref<64x128xf32, #tpu.memory_space<vmem>>, vector<64x128xf32>,
    return
  }
  func.func @transform_0(%arg0: i32) -> (i32, i32) {
    %c0_i32 = arith.constant 0 : i32
    %c0_i32_0 = arith.constant 0 : i32
    return %arg0, %c0_i32 : i32, i32
  }
  func.func @transform_1(%arg0: i32) -> (i32, i32) {
    %c0_i32 = arith.constant 0 : i32
    %c0_i32_0 = arith.constant 0 : i32
    %c0_i32_1 = arith.constant 0 : i32
    return %c0_i32, %c0_i32_0 : i32, i32
  }
  func.func @transform_2(%arg0: i32) -> (i32, i32) {
    %c0_i32 = arith.constant 0 : i32
    %c0_i32_0 = arith.constant 0 : i32
    %c0_i32_1 = arith.constant 0 : i32
    return %c0_i32, %c0_i32_0 : i32, i32
  }
  func.func @transform_3(%arg0: i32) -> (i32, i32) {
    %c0_i32 = arith.constant 0 : i32
    %c0_i32_0 = arith.constant 0 : i32
    %c0_i32_1 = arith.constant 0 : i32
    return %c0_i32, %c0_i32_0 : i32, i32
  }
  func.func @transform_4(%arg0: i32) -> (i32, i32) {
    %c0_i32 = arith.constant 0 : i32
    %c0_i32_0 = arith.constant 0 : i32
    %c0_i32_1 = arith.constant 0 : i32
    return %c0_i32, %c0_i32_0 : i32, i32
  }
  func.func @transform_5(%arg0: i32) -> (i32, i32) {
    %c0_i32 = arith.constant 0 : i32
    %c0_i32_0 = arith.constant 0 : i32
    %c0_i32_1 = arith.constant 0 : i32
    return %c0_i32, %c0_i32_0 : i32, i32
  }
  func.func @transform_6(%arg0: i32) -> (i32, i32) {
    %c0_i32 = arith.constant 0 : i32
    %c0_i32_0 = arith.constant 0 : i32
    %c0_i32_1 = arith.constant 0 : i32
    return %c0_i32, %c0_i32_0 : i32, i32
  }
  func.func @transform_7(%arg0: i32) -> (i32, i32) {
    %c0_i32 = arith.constant 0 : i32
    %c0_i32_0 = arith.constant 0 : i32
    return %arg0, %c0_i32 : i32, i32
  }
}

module attributes {stable_mosaic.version = 11 : i64} {
  func.func @_mlp_fused_kernel(%arg0: i32, %arg1: memref<64x16xf32, #tpu.memory_space<vmem>>, %arg2: memref<16x128xbf16, #tpu.memory_space<vmem>>, %arg3: memref<1x128xf32, #tpu.memory_space<vmem>>, %arg4: memref<128x128xbf16, #tpu.memory_space<vmem>>, %arg5: memref<1x128xf32, #tpu.memory_space<vmem>>, %arg6: memref<128x128xbf16, #tpu.memory_space<vmem>>, %arg7: memref<1x128xf32, #tpu.memory_space<vmem>>, %arg8: memref<64x128xf32, #tpu.memory_space<vmem>>) attributes {dimension_semantics = [#tpu.dimension_semantics<parallel>], iteration_bounds = array<i64: 1>, scalar_prefetch = 0 : i64, scratch_operands = 0 : i64, tpu.core_type = #tpu.core_type<tc>, window_params = [{transform_indices = @transform_0, window_bounds = array<i64: 64, 16>}, {pipeline_mode = #tpu.pipeline_mode<synchronous>, transform_indices = @transform_1, window_bounds = array<i64: 16, 128>}, {pipeline_mode = #tpu.pipeline_mode<synchronous>, transform_indices = @transform_2, window_bounds = array<i64: 1, 128>}, {pipeline_mode = #tpu.pipeline_mode<synchronous>, transform_indices = @transform_3, window_bounds = array<i64: 128, 128>}, {pipeline_mode = #tpu.pipeline_mode<synchronous>, transform_indices = @transform_4, window_bounds = array<i64: 1, 128>}, {pipeline_mode = #tpu.pipeline_mode<synchronous>, transform_indices = @transform_5, window_bounds = array<i64: 128, 128>}, {pipeline_mode = #tpu.pipeline_mode<synchronous>, transform_indices = @transform_6, window_bounds = array<i64: 1, 128>}, {transform_indices = @transform_7, window_bounds = array<i64: 64, 128>}]} {
    %c0 = arith.constant 0 : index
    %c0_0 = arith.constant 0 : index
    %0 = vector.load %arg1[%c0, %c0_0] : memref<64x16xf32, #tpu.memory_space<vmem>>, vector<64x16xf32>
    %c0_1 = arith.constant 0 : index
    %c0_2 = arith.constant 0 : index
    %1 = vector.load %arg2[%c0_1, %c0_2] : memref<16x128xbf16, #tpu.memory_space<vmem>>, vector<16x128xbf16>
    %c0_3 = arith.constant 0 : index
    %c0_4 = arith.constant 0 : index
    %2 = vector.load %arg3[%c0_3, %c0_4] : memref<1x128xf32, #tpu.memory_space<vmem>>, vector<1x128xf32>
    %3 = arith.truncf %0 : vector<64x16xf32> to vector<64x16xbf16>
    %cst = arith.constant dense<0.000000e+00> : vector<64x128xf32>
    %4 = tpu.matmul %3, %1, %cst {dimension_numbers = #tpu.dot_dimension_numbers<[1], [0], [0], [1], [0, 0, 1, 1], [], []>} : vector<64x16xbf16>, vector<16x128xbf16>, vector<64x128xf32> -> vector<64x128xf32>
    %5 = vector.broadcast %2 : vector<1x128xf32> to vector<64x128xf32>
    %6 = arith.addf %4, %5 : vector<64x128xf32>
    %cst_5 = arith.constant 0.000000e+00 : f32
    %7 = vector.broadcast %cst_5 : f32 to vector<64x128xf32>
    %8 = arith.maximumf %6, %7 : vector<64x128xf32>
    %c0_6 = arith.constant 0 : index
    %c0_7 = arith.constant 0 : index
    %9 = vector.load %arg4[%c0_6, %c0_7] : memref<128x128xbf16, #tpu.memory_space<vmem>>, vector<128x128xbf16>
    %c0_8 = arith.constant 0 : index
    %c0_9 = arith.constant 0 : index
    %10 = vector.load %arg5[%c0_8, %c0_9] : memref<1x128xf32, #tpu.memory_space<vmem>>, vector<1x128xf32>
    %11 = arith.truncf %8 : vector<64x128xf32> to vector<64x128xbf16>
    %cst_10 = arith.constant dense<0.000000e+00> : vector<64x128xf32>
    %12 = tpu.matmul %11, %9, %cst_10 {dimension_numbers = #tpu.dot_dimension_numbers<[1], [0], [0], [1], [0, 0, 1, 1], [], []>} : vector<64x128xbf16>, vector<128x128xbf16>, vector<64x128xf32> -> vector<64x128xf32>
    %13 = vector.broadcast %10 : vector<1x128xf32> to vector<64x128xf32>
    %14 = arith.addf %12, %13 : vector<64x128xf32>
    %cst_11 = arith.constant 0.000000e+00 : f32
    %15 = vector.broadcast %cst_11 : f32 to vector<64x128xf32>
    %16 = arith.maximumf %14, %15 : vector<64x128xf32>
    %c0_12 = arith.constant 0 : index
    %c0_13 = arith.constant 0 : index
    %17 = vector.load %arg6[%c0_12, %c0_13] : memref<128x128xbf16, #tpu.memory_space<vmem>>, vector<128x128xbf16>
    %c0_14 = arith.constant 0 : index
    %c0_15 = arith.constant 0 : index
    %18 = vector.load %arg7[%c0_14, %c0_15] : memref<1x128xf32, #tpu.memory_space<vmem>>, vector<1x128xf32>
    %19 = arith.truncf %16 : vector<64x128xf32> to vector<64x128xbf16>
    %cst_16 = arith.constant dense<0.000000e+00> : vector<64x128xf32>
    %20 = tpu.matmul %19, %17, %cst_16 {dimension_numbers = #tpu.dot_dimension_numbers<[1], [0], [0], [1], [0, 0, 1, 1], [], []>} : vector<64x128xbf16>, vector<128x128xbf16>, vector<64x128xf32> -> vector<64x128xf32>
    %21 = vector.broadcast %18 : vector<1x128xf32> to vector<64x128xf32>
    %22 = arith.addf %20, %21 : vector<64x128xf32>
    %c0_17 = arith.constant 0 : index
    %c0_18 = arith.constant 0 : index
    %23 = vector.load %arg8[%c0_17, %c0_18] : memref<64x128xf32, #tpu.memory_space<vmem>>, vector<64x128xf32>
    tpu.vector_store %arg8[%c0_17, %c0_18], %22 {strides = array<i32>} : memref<64x128xf32, #tpu.memory_space<vmem>>, vector<64x128xf32>,
    return
  }
  func.func @transform_0(%arg0: i32) -> (i32, i32) {
    %c0_i32 = arith.constant 0 : i32
    %c0_i32_0 = arith.constant 0 : i32
    return %arg0, %c0_i32 : i32, i32
  }
  func.func @transform_1(%arg0: i32) -> (i32, i32) {
    %c0_i32 = arith.constant 0 : i32
    %c0_i32_0 = arith.constant 0 : i32
    %c0_i32_1 = arith.constant 0 : i32
    return %c0_i32, %c0_i32_0 : i32, i32
  }
  func.func @transform_2(%arg0: i32) -> (i32, i32) {
    %c0_i32 = arith.constant 0 : i32
    %c0_i32_0 = arith.constant 0 : i32
    %c0_i32_1 = arith.constant 0 : i32
    return %c0_i32, %c0_i32_0 : i32, i32
  }
  func.func @transform_3(%arg0: i32) -> (i32, i32) {
    %c0_i32 = arith.constant 0 : i32
    %c0_i32_0 = arith.constant 0 : i32
    %c0_i32_1 = arith.constant 0 : i32
    return %c0_i32, %c0_i32_0 : i32, i32
  }
  func.func @transform_4(%arg0: i32) -> (i32, i32) {
    %c0_i32 = arith.constant 0 : i32
    %c0_i32_0 = arith.constant 0 : i32
    %c0_i32_1 = arith.constant 0 : i32
    return %c0_i32, %c0_i32_0 : i32, i32
  }
  func.func @transform_5(%arg0: i32) -> (i32, i32) {
    %c0_i32 = arith.constant 0 : i32
    %c0_i32_0 = arith.constant 0 : i32
    %c0_i32_1 = arith.constant 0 : i32
    return %c0_i32, %c0_i32_0 : i32, i32
  }
  func.func @transform_6(%arg0: i32) -> (i32, i32) {
    %c0_i32 = arith.constant 0 : i32
    %c0_i32_0 = arith.constant 0 : i32
    %c0_i32_1 = arith.constant 0 : i32
    return %c0_i32, %c0_i32_0 : i32, i32
  }
  func.func @transform_7(%arg0: i32) -> (i32, i32) {
    %c0_i32 = arith.constant 0 : i32
    %c0_i32_0 = arith.constant 0 : i32
    return %arg0, %c0_i32 : i32, i32
  }
}

</mosaic_0001>

<bundles_post_ra>
// kernel: tpu_custom_call.1
= control target key start
LH: loop header
LB: loop body
LE: loop exit
PB: predicated region body
PF: predicated region fallthrough
CT: control target
= control target key end

     0   :  { %12 = vsyncpa [#allocation3], 0  ;;  %s784_s0 = inlined_call_operand.vmem [shape: f32[64,16], index: 0, kind: input, shape index: {}]   ;;  %s785_s1 = inlined_call_operand.vmem [shape: bf16[16,128], index: 1, kind: input, shape index: {}]   ;;  %s786_s2 = inlined_call_operand.vmem [shape: f32[1,128], index: 2, kind: input, shape index: {}]   ;;  %s787_s3 = inlined_call_operand.vmem [shape: bf16[128,128], index: 3, kind: input, shape index: {}]   ;;  %s788_s4 = inlined_call_operand.vmem [shape: f32[1,128], index: 4, kind: input, shape index: {}]   ;;  %s789_s5 = inlined_call_operand.hbm [shape: bf16[128,128], index: 5, kind: input, shape index: {}]   ;;  %s790_s6 = inlined_call_operand.vmem [shape: f32[1,128], index: 6, kind: input, shape index: {}]   ;;  %s791_s7 = inlined_call_operand.hbm [shape: f32[64,128], index: 7, kind: output, shape index: {}]  }
   0x1   :  { %13 = vsyncpa [#allocation4], 0  ;;  %s650_s24 = smov [#allocation2]   ;;  %s602_s28 = scalar_lea.hbm %s789_s5, 1024 }
   0x2   :  { %s29_s25 = sshll.u32 %s650_s24, 4  ;;  %p603_p0 = scmp.ne.s32.totalorder %s789_s5, %s602_s28  ;;  %s30_s25 = int_to_ptr.vmem [resolvable:$true] %s29_s25 }
   0x3   :  { %p606_p1 = scmp.lt.u32.totalorder %s602_s28, %s789_s5 }
   0x5   :  { %p608_p2 = pnand %p606_p1, %p603_p0 }
   0x7   :  { %611 = shalt.err (!%p608_p2)
}
   0x8   :  { %s612_s10 = scalar_lea.vmem %s30_s25, 1024  ;;  %p617_p4 = scmp.lt.s32.totalorder %s30_s25, %s30_s25 }
   0x9   :  { %p613_p3 = scmp.ne.s32.totalorder %s30_s25, %s612_s10  ;;  %p618_p5 = scmp.lt.s32.totalorder %s612_s10, %s612_s10 }
   0xb   :  { %p619_p6 = por %p618_p5, %p617_p4 }
   0xd   :  { %p620_p7 = pnand %p619_p6, %p613_p3 }
   0xf   :  { %623 = shalt.err (!%p620_p7)
}
  0x10   :  { %s651_s11 = smov 64   ;;  %s652_s12 = smov 4  }
  0x11   :  { %35 = dma.hbm_to_vmem [thread:$0]  %s789_s5, 1024, %s30_s25, [#allocation3], %s651_s11, %s651_s11, %s652_s12  }
  0x12   :  { %646 = dma.done.wait [#allocation3], 1024  }
  0x13   :  { %647 = vsyncadd [#allocation3], 4294966272  ;;  %v585_v0 = vld [vmem:[%s785_s1] sm:$0xff]   ;;  %v43_v2 = vld [vmem:[%s784_s0 + $0x8] sm:$0xff]  ;;  %vm69_vm0 = vcmask 130048   ;;  %s653_s24 = smov [#allocation5]  }
  0x14   :  { %v42_v1 = vld [vmem:[%s784_s0] sm:$0xff]  ;;  %v44_v3 = vld [vmem:[%s784_s0 + $0x10] sm:$0xff]  ;;  %521 = vmatprep.subr.bf16.mxu0 %v585_v0  ;;  %v45_v5 = vld [vmem:[%s784_s0 + $0x18] sm:$0xff]  ;;  %s456_s25 = sshll.u32 %s653_s24, 4  ;;  %s457_s25 = int_to_ptr.vmem [resolvable:$true] %s456_s25 }
  0x15   :  { %v53_v4 = vpack.c.bf16 %v43_v2, %v42_v1  ;;  %v46_v6 = vld [vmem:[%s784_s0 + $0x20] sm:$0xff]  ;;  %v47_v7 = vld [vmem:[%s784_s0 + $0x28] sm:$0xff]  ;;  %522 = vmatpush3.bf16.msra.mxu0 %v585_v0  ;;  %v54_v8 = vpack.c.bf16 %v45_v5, %v44_v3  ;;  %v48_v12 = vld [vmem:[%s784_s0 + $0x30] sm:$0xff]  ;;  %p629_p9 = scmp.lt.s32.totalorder %s457_s25, %s457_s25 }
  0x16   :  { %v55_v9 = vpack.c.bf16 %v47_v7, %v46_v6  ;;  %v586_v10 = vld [vmem:[%s787_s3] sm:$0xff]   ;;  %v587_v11 = vld [vmem:[%s787_s3 + $0x8] sm:$0xff]   ;;  %v49_v13 = vld [vmem:[%s784_s0 + $0x38] sm:$0xff] }
  0x17   :  { %523 = vmatprep.mubr.msk.bf16.mxu0 %vm69_vm0, %v53_v4  ;;  %531 = vmatprep.subr.bf16.mxu1 %v586_v10  ;;  %v588_v14 = vld [vmem:[%s787_s3 + $0x10] sm:$0xff]   ;;  %v56_v15 = vpack.c.bf16 %v49_v13, %v48_v12  ;;  %v589_v16 = vld [vmem:[%s787_s3 + $0x18] sm:$0xff]   ;;  %v590_v17 = vld [vmem:[%s787_s3 + $0x20] sm:$0xff]  }
  0x18   :  { %524 = vmatmul.mubr.msk.bf16.vlgmr.msra.gmra.mrb[0].mxu0 %vm69_vm0, %v54_v8  ;;  %532 = vmatpush3.bf16.msra.mxu1 %v586_v10  ;;  %v591_v18 = vld [vmem:[%s787_s3 + $0x28] sm:$0xff]   ;;  %v592_v19 = vld [vmem:[%s787_s3 + $0x30] sm:$0xff]   ;;  %v593_v20 = vld [vmem:[%s787_s3 + $0x38] sm:$0xff]  }
  0x19   :  { %527 = vmatprep.mubr.msk.bf16.mxu0 %vm69_vm0, %v55_v9  ;;  %533 = vmatprep.subr.bf16.mxu1 %v587_v11  ;;  %v594_v21 = vld [vmem:[#allocation2] sm:$0xff]   ;;  %v595_v22 = vld [vmem:[#allocation2 + $0x8] sm:$0xff]   ;;  %v596_v23 = vld [vmem:[#allocation2 + $0x10] sm:$0xff]  }
  0x1a   :  { %555 = vmatprep.subr.bf16.mxu0 %v594_v21  ;;  %v597_v24 = vld [vmem:[#allocation2 + $0x18] sm:$0xff]   ;;  %v598_v25 = vld [vmem:[#allocation2 + $0x20] sm:$0xff]   ;;  %v599_v26 = vld [vmem:[#allocation2 + $0x28] sm:$0xff]  }
  0x1b   :  { %556 = vmatpush3.bf16.msra.mxu0 %v594_v21  ;;  %v468_v27 = vld [vmem:[%s786_s2] ss:$0 sm:$0xff]  ;;  %v600_v56 = vld [vmem:[#allocation2 + $0x30] sm:$0xff]   ;;  %v601_v57 = vld [vmem:[#allocation2 + $0x38] sm:$0xff]  }
  0x1c   :  { %534 = vmatpush3.bf16.msra.mxu1 %v587_v11  ;;  %557 = vmatprep.subr.bf16.mxu0 %v595_v22  ;;  %v474_v58 = vld [vmem:[%s788_s4] ss:$0 sm:$0xff] }
  0x1d   :  { %535 = vmatprep.subr.bf16.mxu1 %v588_v14 }
  0x1f   :  { %558 = vmatpush3.bf16.msra.mxu0 %v595_v22 }
  0x20   :  { %528 = vmatmul.mubr.msk.bf16.gmra.mrb[4].mxu0 %vm69_vm0, %v56_v15  ;;  %536 = vmatpush3.bf16.msra.mxu1 %v588_v14 }
  0x21   :  { %537 = vmatprep.subr.bf16.mxu1 %v589_v16  ;;  %559 = vmatprep.subr.bf16.mxu0 %v596_v23 }
  0x23   :  { %560 = vmatpush3.bf16.msra.mxu0 %v596_v23  ;;  %v483_v23 = vld [vmem:[%s790_s6] ss:$0 sm:$0xff]  ;;  %s624_s6 = scalar_lea.vmem %s457_s25, 1024 }
  0x24   :  { %538 = vmatpush3.bf16.msra.mxu1 %v589_v16  ;;  %561 = vmatprep.subr.bf16.mxu0 %v597_v24  ;;  %p625_p8 = scmp.ne.s32.totalorder %s457_s25, %s624_s6  ;;  %p630_p10 = scmp.lt.s32.totalorder %s624_s6, %s624_s6 }
  0x25   :  { %539 = vmatprep.subr.bf16.mxu1 %v590_v17 }
  0x26   :  { %p631_p11 = por %p630_p10, %p629_p9 }
  0x27   :  { %562 = vmatpush3.bf16.msra.mxu0 %v597_v24 }
  0x28   :  { %540 = vmatpush3.bf16.msra.mxu1 %v590_v17  ;;  %563 = vmatprep.subr.bf16.mxu0 %v598_v25  ;;  %p632_p12 = pnand %p631_p11, %p625_p8 }
  0x29   :  { %541 = vmatprep.subr.bf16.mxu1 %v591_v18 }
  0x2b   :  { %564 = vmatpush3.bf16.msra.mxu0 %v598_v25 }
  0x2c   :  { %542 = vmatpush3.bf16.msra.mxu1 %v591_v18  ;;  %565 = vmatprep.subr.bf16.mxu0 %v599_v26 }
  0x2d   :  { %543 = vmatprep.subr.bf16.mxu1 %v592_v19 }
  0x2f   :  { %566 = vmatpush3.bf16.msra.mxu0 %v599_v26 }
  0x30   :  { %544 = vmatpush3.bf16.msra.mxu1 %v592_v19  ;;  %567 = vmatprep.subr.bf16.mxu0 %v600_v56 }
  0x31   :  { %545 = vmatprep.subr.bf16.mxu1 %v593_v20 }
  0x33   :  { %568 = vmatpush3.bf16.msra.mxu0 %v600_v56 }
  0x34   :  { %546 = vmatpush3.bf16.msra.mxu1 %v593_v20  ;;  %569 = vmatprep.subr.bf16.mxu0 %v601_v57 }
  0x37   :  { %570 = vmatpush3.bf16.msra.mxu0 %v601_v57 }
  0xeb   :  { %v525_v28 = vpop.f32.mrb[0].mxu0 }
  0xec   :  { %v125_v29 = vadd.f32 %v525_v28, %v468_v27  ;;  %v116_v30 = vpop.f32.mrb[1].mxu0 }
  0xed   :  { %v117_v31 = vadd.f32 %v468_v27, %v116_v30  ;;  %v526_v32 = vpop.f32.mrb[2].mxu0 }
  0xee   :  { %v128_v33 = vadd.f32 %v526_v32, %v468_v27  ;;  %v119_v34 = vpop.f32.mrb[3].mxu0  ;;  %v149_v36 = vmax.f32 %v125_v29, 0.0 }
  0xef   :  { %v120_v35 = vadd.f32 %v468_v27, %v119_v34  ;;  %v147_v38 = vmax.f32 %v117_v31, 0.0 }
  0xf0   :  { %v150_v37 = vmax.f32 %v128_v33, 0.0 }
  0xf1   :  { %v148_v39 = vmax.f32 %v120_v35, 0.0 }
  0xf2   :  { %v173_v40 = vpack.c.bf16 %v150_v37, %v149_v36 }
  0xf3   :  { %v529_v41 = vpop.f32.mrb[4].mxu0  ;;  %v172_v42 = vpack.c.bf16 %v148_v39, %v147_v38 }
  0xf4   :  { %v141_v43 = vadd.f32 %v529_v41, %v468_v27  ;;  %v132_v44 = vpop.f32.mrb[5].mxu0 }
  0xf5   :  { %v133_v45 = vadd.f32 %v468_v27, %v132_v44  ;;  %v530_v46 = vpop.f32.mrb[6].mxu0  ;;  %547 = vmatprep.mubr.bf16.mxu1 %v172_v42 }
  0xf6   :  { %v144_v47 = vadd.f32 %v530_v46, %v468_v27  ;;  %v135_v48 = vpop.f32.mrb[7].mxu0  ;;  %548 = vmatmul.mubr.bf16.vlgmr.msra.gmra.mrb[0].mxu1 %v173_v40  ;;  %v153_v50 = vmax.f32 %v141_v43, 0.0 }
  0xf7   :  { %v136_v49 = vadd.f32 %v468_v27, %v135_v48  ;;  %v151_v52 = vmax.f32 %v133_v45, 0.0 }
  0xf8   :  { %v154_v51 = vmax.f32 %v144_v47, 0.0 }
  0xf9   :  { %v152_v53 = vmax.f32 %v136_v49, 0.0 }
  0xfa   :  { %v175_v54 = vpack.c.bf16 %v154_v51, %v153_v50 }
  0xfb   :  { %v174_v55 = vpack.c.bf16 %v152_v53, %v151_v52 }
  0xfd   :  { %551 = vmatprep.mubr.bf16.mxu1 %v174_v55 }
  0xfe   :  { %552 = vmatmul.mubr.bf16.gmra.mrb[4].mxu1 %v175_v54 }
 0x1c9   :  { %v549_v59 = vpop.f32.mrb[0].mxu1 }
 0x1ca   :  { %v273_v60 = vadd.f32 %v549_v59, %v474_v58  ;;  %v264_v61 = vpop.f32.mrb[1].mxu1 }
 0x1cb   :  { %v265_v62 = vadd.f32 %v474_v58, %v264_v61  ;;  %v550_v63 = vpop.f32.mrb[2].mxu1 }
 0x1cc   :  { %v276_v0 = vadd.f32 %v550_v63, %v474_v58  ;;  %v267_v1 = vpop.f32.mrb[3].mxu1  ;;  %v297_v3 = vmax.f32 %v273_v60, 0.0 }
 0x1cd   :  { %v268_v2 = vadd.f32 %v474_v58, %v267_v1  ;;  %v295_v5 = vmax.f32 %v265_v62, 0.0 }
 0x1ce   :  { %v298_v4 = vmax.f32 %v276_v0, 0.0 }
 0x1cf   :  { %v296_v6 = vmax.f32 %v268_v2, 0.0 }
 0x1d0   :  { %v321_v7 = vpack.c.bf16 %v298_v4, %v297_v3 }
 0x1d1   :  { %v320_v8 = vpack.c.bf16 %v296_v6, %v295_v5  ;;  %v553_v9 = vpop.f32.mrb[4].mxu1 }
 0x1d2   :  { %v289_v10 = vadd.f32 %v553_v9, %v474_v58  ;;  %v280_v11 = vpop.f32.mrb[5].mxu1 }
 0x1d3   :  { %v281_v12 = vadd.f32 %v474_v58, %v280_v11  ;;  %v554_v13 = vpop.f32.mrb[6].mxu1  ;;  %571 = vmatprep.mubr.bf16.mxu0 %v320_v8 }
 0x1d4   :  { %v292_v14 = vadd.f32 %v554_v13, %v474_v58  ;;  %v283_v15 = vpop.f32.mrb[7].mxu1  ;;  %572 = vmatmul.mubr.bf16.vlgmr.msra.gmra.mrb[8].mxu0 %v321_v7  ;;  %v301_v17 = vmax.f32 %v289_v10, 0.0 }
 0x1d5   :  { %v284_v16 = vadd.f32 %v474_v58, %v283_v15  ;;  %v299_v19 = vmax.f32 %v281_v12, 0.0 }
 0x1d6   :  { %v302_v18 = vmax.f32 %v292_v14, 0.0 }
 0x1d7   :  { %v300_v20 = vmax.f32 %v284_v16, 0.0 }
 0x1d8   :  { %v323_v21 = vpack.c.bf16 %v302_v18, %v301_v17 }
 0x1d9   :  { %v322_v22 = vpack.c.bf16 %v300_v20, %v299_v19 }
 0x1db   :  { %575 = vmatprep.mubr.bf16.mxu0 %v322_v22 }
 0x1dc   :  { %576 = vmatmul.mubr.bf16.gmra.mrb[12].mxu0 %v323_v21 }
 0x2a7   :  { %v573_v24 = vpop.f32.mrb[8].mxu0 }
 0x2a8   :  { %v421_v25 = vadd.f32 %v573_v24, %v483_v23  ;;  %v412_v26 = vpop.f32.mrb[9].mxu0 }
 0x2a9   :  { %v413_v27 = vadd.f32 %v483_v23, %v412_v26  ;;  %v574_v28 = vpop.f32.mrb[10].mxu0 }
 0x2aa   :  { %445 = vst [vmem:[#allocation5 + $0x10] sm:$0xff] %v421_v25  ;;  %v424_v29 = vadd.f32 %v574_v28, %v483_v23  ;;  %v415_v30 = vpop.f32.mrb[11].mxu0 }
 0x2ab   :  { %443 = vst [vmem:[#allocation5] sm:$0xff] %v413_v27  ;;  %v416_v31 = vadd.f32 %v483_v23, %v415_v30 }
 0x2ac   :  { %446 = vst [vmem:[#allocation5 + $0x18] sm:$0xff] %v424_v29 }
 0x2ad   :  { %444 = vst [vmem:[#allocation5 + $0x8] sm:$0xff] %v416_v31 }
 0x2af   :  { %v577_v32 = vpop.f32.mrb[12].mxu0 }
 0x2b0   :  { %v437_v33 = vadd.f32 %v577_v32, %v483_v23  ;;  %v428_v34 = vpop.f32.mrb[13].mxu0 }
 0x2b1   :  { %v429_v35 = vadd.f32 %v483_v23, %v428_v34  ;;  %v578_v36 = vpop.f32.mrb[14].mxu0 }
 0x2b2   :  { %449 = vst [vmem:[#allocation5 + $0x30] sm:$0xff] %v437_v33  ;;  %v440_v37 = vadd.f32 %v578_v36, %v483_v23  ;;  %v431_v38 = vpop.f32.mrb[15].mxu0 }
 0x2b3   :  { %447 = vst [vmem:[#allocation5 + $0x20] sm:$0xff] %v429_v35  ;;  %v432_v39 = vadd.f32 %v483_v23, %v431_v38 }
 0x2b4   :  { %450 = vst [vmem:[#allocation5 + $0x38] sm:$0xff] %v440_v37 }
 0x2b5   :  { %448 = vst [vmem:[#allocation5 + $0x28] sm:$0xff] %v432_v39 }
 0x2b6   :  { %635 = shalt.err (!%p632_p12)
}
 0x2b7   :  { %s636_s28 = scalar_lea.hbm %s791_s7, 1024 }
 0x2b8   :  { %p637_p13 = scmp.ne.s32.totalorder %s791_s7, %s636_s28  ;;  %p640_p0 = scmp.lt.u32.totalorder %s636_s28, %s791_s7 }
 0x2ba   :  { %p642_p1 = pnand %p640_p0, %p637_p13 }
 0x2bc   :  { %645 = shalt.err (!%p642_p1)
}
 0x2bd   :  { %s654_s10 = smov 128   ;;  %s655_s11 = smov 8  }
 0x2be   :  { %462 = dma.vmem_to_hbm [thread:$0]  %s457_s25, 1024, %s791_s7, [#allocation4], %s654_s10, %s654_s10, %s655_s11  }
 0x2bf   :  { %648 = dma.done.wait [#allocation4], 1024  }
 0x2c0   :  { %649 = vsyncadd [#allocation4], 4294966272 }
 0x2c1   :  { %466 = vsyncpa [#allocation3], 1 }
 0x2c2   :  { %467 = vsyncpa [#allocation4], 1 }

// kernel: tpu_custom_call.1
= control target key start
LH: loop header
LB: loop body
LE: loop exit
PB: predicated region body
PF: predicated region fallthrough
CT: control target
= control target key end

     0   :  { %12 = vsyncpa [#allocation3], 0  ;;  %s784_s0 = inlined_call_operand.vmem [shape: f32[64,16], index: 0, kind: input, shape index: {}]   ;;  %s785_s1 = inlined_call_operand.vmem [shape: bf16[16,128], index: 1, kind: input, shape index: {}]   ;;  %s786_s2 = inlined_call_operand.vmem [shape: f32[1,128], index: 2, kind: input, shape index: {}]   ;;  %s787_s3 = inlined_call_operand.vmem [shape: bf16[128,128], index: 3, kind: input, shape index: {}]   ;;  %s788_s4 = inlined_call_operand.vmem [shape: f32[1,128], index: 4, kind: input, shape index: {}]   ;;  %s789_s5 = inlined_call_operand.hbm [shape: bf16[128,128], index: 5, kind: input, shape index: {}]   ;;  %s790_s6 = inlined_call_operand.vmem [shape: f32[1,128], index: 6, kind: input, shape index: {}]   ;;  %s791_s7 = inlined_call_operand.hbm [shape: f32[64,128], index: 7, kind: output, shape index: {}]  }
   0x1   :  { %13 = vsyncpa [#allocation4], 0  ;;  %s650_s24 = smov [#allocation2]   ;;  %s602_s28 = scalar_lea.hbm %s789_s5, 1024 }
   0x2   :  { %s29_s25 = sshll.u32 %s650_s24, 4  ;;  %p603_p0 = scmp.ne.s32.totalorder %s789_s5, %s602_s28  ;;  %s30_s25 = int_to_ptr.vmem [resolvable:$true] %s29_s25 }
   0x3   :  { %p606_p1 = scmp.lt.u32.totalorder %s602_s28, %s789_s5 }
   0x5   :  { %p608_p2 = pnand %p606_p1, %p603_p0 }
   0x7   :  { %611 = shalt.err (!%p608_p2)
}
   0x8   :  { %s612_s10 = scalar_lea.vmem %s30_s25, 1024  ;;  %p617_p4 = scmp.lt.s32.totalorder %s30_s25, %s30_s25 }
   0x9   :  { %p613_p3 = scmp.ne.s32.totalorder %s30_s25, %s612_s10  ;;  %p618_p5 = scmp.lt.s32.totalorder %s612_s10, %s612_s10 }
   0xb   :  { %p619_p6 = por %p618_p5, %p617_p4 }
   0xd   :  { %p620_p7 = pnand %p619_p6, %p613_p3 }
   0xf   :  { %623 = shalt.err (!%p620_p7)
}
  0x10   :  { %s651_s11 = smov 64   ;;  %s652_s12 = smov 4  }
  0x11   :  { %35 = dma.hbm_to_vmem [thread:$0]  %s789_s5, 1024, %s30_s25, [#allocation3], %s651_s11, %s651_s11, %s652_s12  }
  0x12   :  { %646 = dma.done.wait [#allocation3], 1024  }
  0x13   :  { %647 = vsyncadd [#allocation3], 4294966272  ;;  %v585_v0 = vld [vmem:[%s785_s1] sm:$0xff]   ;;  %v43_v2 = vld [vmem:[%s784_s0 + $0x8] sm:$0xff]  ;;  %vm69_vm0 = vcmask 130048   ;;  %s653_s24 = smov [#allocation5]  }
  0x14   :  { %v42_v1 = vld [vmem:[%s784_s0] sm:$0xff]  ;;  %v44_v3 = vld [vmem:[%s784_s0 + $0x10] sm:$0xff]  ;;  %521 = vmatprep.subr.bf16.mxu0 %v585_v0  ;;  %v45_v5 = vld [vmem:[%s784_s0 + $0x18] sm:$0xff]  ;;  %s456_s25 = sshll.u32 %s653_s24, 4  ;;  %s457_s25 = int_to_ptr.vmem [resolvable:$true] %s456_s25 }
  0x15   :  { %v53_v4 = vpack.c.bf16 %v43_v2, %v42_v1  ;;  %v46_v6 = vld [vmem:[%s784_s0 + $0x20] sm:$0xff]  ;;  %v47_v7 = vld [vmem:[%s784_s0 + $0x28] sm:$0xff]  ;;  %522 = vmatpush3.bf16.msra.mxu0 %v585_v0  ;;  %v54_v8 = vpack.c.bf16 %v45_v5, %v44_v3  ;;  %v48_v12 = vld [vmem:[%s784_s0 + $0x30] sm:$0xff]  ;;  %p629_p9 = scmp.lt.s32.totalorder %s457_s25, %s457_s25 }
  0x16   :  { %v55_v9 = vpack.c.bf16 %v47_v7, %v46_v6  ;;  %v586_v10 = vld [vmem:[%s787_s3] sm:$0xff]   ;;  %v587_v11 = vld [vmem:[%s787_s3 + $0x8] sm:$0xff]   ;;  %v49_v13 = vld [vmem:[%s784_s0 + $0x38] sm:$0xff] }
  0x17   :  { %523 = vmatprep.mubr.msk.bf16.mxu0 %vm69_vm0, %v53_v4  ;;  %531 = vmatprep.subr.bf16.mxu1 %v586_v10  ;;  %v588_v14 = vld [vmem:[%s787_s3 + $0x10] sm:$0xff]   ;;  %v56_v15 = vpack.c.bf16 %v49_v13, %v48_v12  ;;  %v589_v16 = vld [vmem:[%s787_s3 + $0x18] sm:$0xff]   ;;  %v590_v17 = vld [vmem:[%s787_s3 + $0x20] sm:$0xff]  }
  0x18   :  { %524 = vmatmul.mubr.msk.bf16.vlgmr.msra.gmra.mrb[0].mxu0 %vm69_vm0, %v54_v8  ;;  %532 = vmatpush3.bf16.msra.mxu1 %v586_v10  ;;  %v591_v18 = vld [vmem:[%s787_s3 + $0x28] sm:$0xff]   ;;  %v592_v19 = vld [vmem:[%s787_s3 + $0x30] sm:$0xff]   ;;  %v593_v20 = vld [vmem:[%s787_s3 + $0x38] sm:$0xff]  }
  0x19   :  { %527 = vmatprep.mubr.msk.bf16.mxu0 %vm69_vm0, %v55_v9  ;;  %533 = vmatprep.subr.bf16.mxu1 %v587_v11  ;;  %v594_v21 = vld [vmem:[#allocation2] sm:$0xff]   ;;  %v595_v22 = vld [vmem:[#allocation2 + $0x8] sm:$0xff]   ;;  %v596_v23 = vld [vmem:[#allocation2 + $0x10] sm:$0xff]  }
  0x1a   :  { %555 = vmatprep.subr.bf16.mxu0 %v594_v21  ;;  %v597_v24 = vld [vmem:[#allocation2 + $0x18] sm:$0xff]   ;;  %v598_v25 = vld [vmem:[#allocation2 + $0x20] sm:$0xff]   ;;  %v599_v26 = vld [vmem:[#allocation2 + $0x28] sm:$0xff]  }
  0x1b   :  { %556 = vmatpush3.bf16.msra.mxu0 %v594_v21  ;;  %v468_v27 = vld [vmem:[%s786_s2] ss:$0 sm:$0xff]  ;;  %v600_v56 = vld [vmem:[#allocation2 + $0x30] sm:$0xff]   ;;  %v601_v57 = vld [vmem:[#allocation2 + $0x38] sm:$0xff]  }
  0x1c   :  { %534 = vmatpush3.bf16.msra.mxu1 %v587_v11  ;;  %557 = vmatprep.subr.bf16.mxu0 %v595_v22  ;;  %v474_v58 = vld [vmem:[%s788_s4] ss:$0 sm:$0xff] }
  0x1d   :  { %535 = vmatprep.subr.bf16.mxu1 %v588_v14 }
  0x1f   :  { %558 = vmatpush3.bf16.msra.mxu0 %v595_v22 }
  0x20   :  { %528 = vmatmul.mubr.msk.bf16.gmra.mrb[4].mxu0 %vm69_vm0, %v56_v15  ;;  %536 = vmatpush3.bf16.msra.mxu1 %v588_v14 }
  0x21   :  { %537 = vmatprep.subr.bf16.mxu1 %v589_v16  ;;  %559 = vmatprep.subr.bf16.mxu0 %v596_v23 }
  0x23   :  { %560 = vmatpush3.bf16.msra.mxu0 %v596_v23  ;;  %v483_v23 = vld [vmem:[%s790_s6] ss:$0 sm:$0xff]  ;;  %s624_s6 = scalar_lea.vmem %s457_s25, 1024 }
  0x24   :  { %538 = vmatpush3.bf16.msra.mxu1 %v589_v16  ;;  %561 = vmatprep.subr.bf16.mxu0 %v597_v24  ;;  %p625_p8 = scmp.ne.s32.totalorder %s457_s25, %s624_s6  ;;  %p630_p10 = scmp.lt.s32.totalorder %s624_s6, %s624_s6 }
  0x25   :  { %539 = vmatprep.subr.bf16.mxu1 %v590_v17 }
  0x26   :  { %p631_p11 = por %p630_p10, %p629_p9 }
  0x27   :  { %562 = vmatpush3.bf16.msra.mxu0 %v597_v24 }
  0x28   :  { %540 = vmatpush3.bf16.msra.mxu1 %v590_v17  ;;  %563 = vmatprep.subr.bf16.mxu0 %v598_v25  ;;  %p632_p12 = pnand %p631_p11, %p625_p8 }
  0x29   :  { %541 = vmatprep.subr.bf16.mxu1 %v591_v18 }
  0x2b   :  { %564 = vmatpush3.bf16.msra.mxu0 %v598_v25 }
  0x2c   :  { %542 = vmatpush3.bf16.msra.mxu1 %v591_v18  ;;  %565 = vmatprep.subr.bf16.mxu0 %v599_v26 }
  0x2d   :  { %543 = vmatprep.subr.bf16.mxu1 %v592_v19 }
  0x2f   :  { %566 = vmatpush3.bf16.msra.mxu0 %v599_v26 }
  0x30   :  { %544 = vmatpush3.bf16.msra.mxu1 %v592_v19  ;;  %567 = vmatprep.subr.bf16.mxu0 %v600_v56 }
  0x31   :  { %545 = vmatprep.subr.bf16.mxu1 %v593_v20 }
  0x33   :  { %568 = vmatpush3.bf16.msra.mxu0 %v600_v56 }
  0x34   :  { %546 = vmatpush3.bf16.msra.mxu1 %v593_v20  ;;  %569 = vmatprep.subr.bf16.mxu0 %v601_v57 }
  0x37   :  { %570 = vmatpush3.bf16.msra.mxu0 %v601_v57 }
  0xeb   :  { %v525_v28 = vpop.f32.mrb[0].mxu0 }
  0xec   :  { %v125_v29 = vadd.f32 %v525_v28, %v468_v27  ;;  %v116_v30 = vpop.f32.mrb[1].mxu0 }
  0xed   :  { %v117_v31 = vadd.f32 %v468_v27, %v116_v30  ;;  %v526_v32 = vpop.f32.mrb[2].mxu0 }
  0xee   :  { %v128_v33 = vadd.f32 %v526_v32, %v468_v27  ;;  %v119_v34 = vpop.f32.mrb[3].mxu0  ;;  %v149_v36 = vmax.f32 %v125_v29, 0.0 }
  0xef   :  { %v120_v35 = vadd.f32 %v468_v27, %v119_v34  ;;  %v147_v38 = vmax.f32 %v117_v31, 0.0 }
  0xf0   :  { %v150_v37 = vmax.f32 %v128_v33, 0.0 }
  0xf1   :  { %v148_v39 = vmax.f32 %v120_v35, 0.0 }
  0xf2   :  { %v173_v40 = vpack.c.bf16 %v150_v37, %v149_v36 }
  0xf3   :  { %v529_v41 = vpop.f32.mrb[4].mxu0  ;;  %v172_v42 = vpack.c.bf16 %v148_v39, %v147_v38 }
  0xf4   :  { %v141_v43 = vadd.f32 %v529_v41, %v468_v27  ;;  %v132_v44 = vpop.f32.mrb[5].mxu0 }
  0xf5   :  { %v133_v45 = vadd.f32 %v468_v27, %v132_v44  ;;  %v530_v46 = vpop.f32.mrb[6].mxu0  ;;  %547 = vmatprep.mubr.bf16.mxu1 %v172_v42 }
  0xf6   :  { %v144_v47 = vadd.f32 %v530_v46, %v468_v27  ;;  %v135_v48 = vpop.f32.mrb[7].mxu0  ;;  %548 = vmatmul.mubr.bf16.vlgmr.msra.gmra.mrb[0].mxu1 %v173_v40  ;;  %v153_v50 = vmax.f32 %v141_v43, 0.0 }
  0xf7   :  { %v136_v49 = vadd.f32 %v468_v27, %v135_v48  ;;  %v151_v52 = vmax.f32 %v133_v45, 0.0 }
  0xf8   :  { %v154_v51 = vmax.f32 %v144_v47, 0.0 }
  0xf9   :  { %v152_v53 = vmax.f32 %v136_v49, 0.0 }
  0xfa   :  { %v175_v54 = vpack.c.bf16 %v154_v51, %v153_v50 }
  0xfb   :  { %v174_v55 = vpack.c.bf16 %v152_v53, %v151_v52 }
  0xfd   :  { %551 = vmatprep.mubr.bf16.mxu1 %v174_v55 }
  0xfe   :  { %552 = vmatmul.mubr.bf16.gmra.mrb[4].mxu1 %v175_v54 }
 0x1c9   :  { %v549_v59 = vpop.f32.mrb[0].mxu1 }
 0x1ca   :  { %v273_v60 = vadd.f32 %v549_v59, %v474_v58  ;;  %v264_v61 = vpop.f32.mrb[1].mxu1 }
 0x1cb   :  { %v265_v62 = vadd.f32 %v474_v58, %v264_v61  ;;  %v550_v63 = vpop.f32.mrb[2].mxu1 }
 0x1cc   :  { %v276_v0 = vadd.f32 %v550_v63, %v474_v58  ;;  %v267_v1 = vpop.f32.mrb[3].mxu1  ;;  %v297_v3 = vmax.f32 %v273_v60, 0.0 }
 0x1cd   :  { %v268_v2 = vadd.f32 %v474_v58, %v267_v1  ;;  %v295_v5 = vmax.f32 %v265_v62, 0.0 }
 0x1ce   :  { %v298_v4 = vmax.f32 %v276_v0, 0.0 }
 0x1cf   :  { %v296_v6 = vmax.f32 %v268_v2, 0.0 }
 0x1d0   :  { %v321_v7 = vpack.c.bf16 %v298_v4, %v297_v3 }
 0x1d1   :  { %v320_v8 = vpack.c.bf16 %v296_v6, %v295_v5  ;;  %v553_v9 = vpop.f32.mrb[4].mxu1 }
 0x1d2   :  { %v289_v10 = vadd.f32 %v553_v9, %v474_v58  ;;  %v280_v11 = vpop.f32.mrb[5].mxu1 }
 0x1d3   :  { %v281_v12 = vadd.f32 %v474_v58, %v280_v11  ;;  %v554_v13 = vpop.f32.mrb[6].mxu1  ;;  %571 = vmatprep.mubr.bf16.mxu0 %v320_v8 }
 0x1d4   :  { %v292_v14 = vadd.f32 %v554_v13, %v474_v58  ;;  %v283_v15 = vpop.f32.mrb[7].mxu1  ;;  %572 = vmatmul.mubr.bf16.vlgmr.msra.gmra.mrb[8].mxu0 %v321_v7  ;;  %v301_v17 = vmax.f32 %v289_v10, 0.0 }
 0x1d5   :  { %v284_v16 = vadd.f32 %v474_v58, %v283_v15  ;;  %v299_v19 = vmax.f32 %v281_v12, 0.0 }
 0x1d6   :  { %v302_v18 = vmax.f32 %v292_v14, 0.0 }
 0x1d7   :  { %v300_v20 = vmax.f32 %v284_v16, 0.0 }
 0x1d8   :  { %v323_v21 = vpack.c.bf16 %v302_v18, %v301_v17 }
 0x1d9   :  { %v322_v22 = vpack.c.bf16 %v300_v20, %v299_v19 }
 0x1db   :  { %575 = vmatprep.mubr.bf16.mxu0 %v322_v22 }
 0x1dc   :  { %576 = vmatmul.mubr.bf16.gmra.mrb[12].mxu0 %v323_v21 }
 0x2a7   :  { %v573_v24 = vpop.f32.mrb[8].mxu0 }
 0x2a8   :  { %v421_v25 = vadd.f32 %v573_v24, %v483_v23  ;;  %v412_v26 = vpop.f32.mrb[9].mxu0 }
 0x2a9   :  { %v413_v27 = vadd.f32 %v483_v23, %v412_v26  ;;  %v574_v28 = vpop.f32.mrb[10].mxu0 }
 0x2aa   :  { %445 = vst [vmem:[#allocation5 + $0x10] sm:$0xff] %v421_v25  ;;  %v424_v29 = vadd.f32 %v574_v28, %v483_v23  ;;  %v415_v30 = vpop.f32.mrb[11].mxu0 }
 0x2ab   :  { %443 = vst [vmem:[#allocation5] sm:$0xff] %v413_v27  ;;  %v416_v31 = vadd.f32 %v483_v23, %v415_v30 }
 0x2ac   :  { %446 = vst [vmem:[#allocation5 + $0x18] sm:$0xff] %v424_v29 }
 0x2ad   :  { %444 = vst [vmem:[#allocation5 + $0x8] sm:$0xff] %v416_v31 }
 0x2af   :  { %v577_v32 = vpop.f32.mrb[12].mxu0 }
 0x2b0   :  { %v437_v33 = vadd.f32 %v577_v32, %v483_v23  ;;  %v428_v34 = vpop.f32.mrb[13].mxu0 }
 0x2b1   :  { %v429_v35 = vadd.f32 %v483_v23, %v428_v34  ;;  %v578_v36 = vpop.f32.mrb[14].mxu0 }
 0x2b2   :  { %449 = vst [vmem:[#allocation5 + $0x30] sm:$0xff] %v437_v33  ;;  %v440_v37 = vadd.f32 %v578_v36, %v483_v23  ;;  %v431_v38 = vpop.f32.mrb[15].mxu0 }
 0x2b3   :  { %447 = vst [vmem:[#allocation5 + $0x20] sm:$0xff] %v429_v35  ;;  %v432_v39 = vadd.f32 %v483_v23, %v431_v38 }
 0x2b4   :  { %450 = vst [vmem:[#allocation5 + $0x38] sm:$0xff] %v440_v37 }
 0x2b5   :  { %448 = vst [vmem:[#allocation5 + $0x28] sm:$0xff] %v432_v39 }
 0x2b6   :  { %635 = shalt.err (!%p632_p12)
}
 0x2b7   :  { %s636_s28 = scalar_lea.hbm %s791_s7, 1024 }
 0x2b8   :  { %p637_p13 = scmp.ne.s32.totalorder %s791_s7, %s636_s28  ;;  %p640_p0 = scmp.lt.u32.totalorder %s636_s28, %s791_s7 }
 0x2ba   :  { %p642_p1 = pnand %p640_p0, %p637_p13 }
 0x2bc   :  { %645 = shalt.err (!%p642_p1)
}
 0x2bd   :  { %s654_s10 = smov 128   ;;  %s655_s11 = smov 8  }
 0x2be   :  { %462 = dma.vmem_to_hbm [thread:$0]  %s457_s25, 1024, %s791_s7, [#allocation4], %s654_s10, %s654_s10, %s655_s11  }
 0x2bf   :  { %648 = dma.done.wait [#allocation4], 1024  }
 0x2c0   :  { %649 = vsyncadd [#allocation4], 4294966272 }
 0x2c1   :  { %466 = vsyncpa [#allocation3], 1 }
 0x2c2   :  { %467 = vsyncpa [#allocation4], 1 }

</bundles_post_ra>
